<compile_context>
chip_gen: v6e
topology: v6e:2x2x1
jax: 0.10.0
libtpu: 0.0.40
codegen_flags: <defaults>
</compile_context>

<pallas_src>
import functools

import jax
import jax.numpy as jnp
from jax.experimental import pallas as pl
from jax.experimental.pallas import tpu as pltpu

EPS = 1e-5
_LANE = 128
_SUBLANE = 8
_MAX_TILE_N = 1024            # lane-dense tile cap (bigger tiles on v5e/v6e)
_COMPUTE_DTYPE = jnp.bfloat16


def _round_up(x, m):
    return ((x + m - 1) // m) * m


def _vmem_budget_bytes():
    """Chip-adaptive per-call VMEM budget (v7x: 64 MiB/TC, v5e/v6e: 128 MiB)."""
    cap = 64 << 20
    try:
        cap = int(pltpu.get_tpu_info().vmem_capacity_bytes)
    except Exception:
        pass
    return max(32 << 20, min(cap * 3 // 4, 100 << 20))


# --------------------------- parameter prep ----------------------------------


def init_params(key, input_dim, hidden_dim, output_dim):
    """nn.Linear-style init (U(+-1/sqrt(fan_in))); BN gamma=1, beta=0.
    Weights stored [in, out]; biases / gamma / beta stored [1, out] (f32)."""
    half = hidden_dim // 2
    dims = [(input_dim, hidden_dim), (hidden_dim, hidden_dim),
            (hidden_dim, hidden_dim), (hidden_dim, half),
            (half, half), (half, output_dim)]
    params = []
    keys = jax.random.split(key, 2 * len(dims))
    for i, (fan_in, fan_out) in enumerate(dims):
        bound = 1.0 / float(fan_in) ** 0.5
        w = jax.random.uniform(keys[2 * i], (fan_in, fan_out),
                               minval=-bound, maxval=bound, dtype=jnp.float32)
        b = jax.random.uniform(keys[2 * i + 1], (1, fan_out),
                               minval=-bound, maxval=bound, dtype=jnp.float32)
        params += [w, b]
        if i < 5:  # BN only after the first 5 linears
            params += [jnp.ones((1, fan_out), jnp.float32),
                       jnp.zeros((1, fan_out), jnp.float32)]
    return params


def prepare_params(params, compute_dtype=_COMPUTE_DTYPE):
    """ONE-TIME preparation (hoisted out of forward): zero-pad every weight /
    bias / gamma / beta to lane-dense (multiples of 128) shapes and cast the
    weights to the MXU compute dtype.  Reuse the result across forward calls so
    each step reads a single bf16 copy of the weights from HBM."""
    def pad_w(w):
        k, n = w.shape
        kp, npad = _round_up(k, _LANE), _round_up(n, _LANE)
        return jnp.zeros((kp, npad), compute_dtype).at[:k, :n].set(
            w.astype(compute_dtype))

    def pad_v(v, npad):
        return jnp.zeros((1, npad), jnp.float32).at[:, :v.shape[1]].set(
            v.astype(jnp.float32))

    layers = []
    idx = 0
    for _ in range(5):
        w, b, g, be = params[idx:idx + 4]
        idx += 4
        wp = pad_w(w)
        npad = wp.shape[1]
        layers.append((wp, pad_v(b, npad), pad_v(g, npad), pad_v(be, npad)))
    w, b = params[idx:idx + 2]
    wp = pad_w(w)
    return {
        "layers": layers,
        "out": (wp, pad_v(b, wp.shape[1])),
        "input_dim": params[0].shape[0],
        "output_dim": w.shape[1],
        "compute_dtype": compute_dtype,
    }


# ------------------------------ kernels --------------------------------------


def _fused_mlp_kernel(*refs, real_b, n_bn, compute_dtype):
    """Whole MLP in one invocation; inter-layer activations stay in VMEM.
    refs = (mask, x, [w, b, gamma, beta] * n_bn, w_out, b_out, o)."""
    mask_ref, x_ref = refs[0], refs[1]
    o_ref = refs[-1]
    p = refs[2:-1]

    inv_b = jnp.float32(1.0 / real_b)
    m = mask_ref[...]                      # (b_pad, 1) f32: 1 real row, 0 pad
    h = x_ref[...]
    i = 0
    for _ in range(n_bn):
        w, b, g, be = p[i], p[i + 1], p[i + 2], p[i + 3]
        i += 4
        z = jnp.dot(h, w[...], preferred_element_type=jnp.float32)
        z = jnp.maximum(z + b[...], 0.0)
        zm = z * m                         # pad rows excluded from statistics
        mean = jnp.sum(zm, axis=0, keepdims=True) * inv_b
        d = (zm - mean) * m                # centered 2-pass variance (no cancellation)
        var = jnp.sum(d * d, axis=0, keepdims=True) * inv_b
        scale = g[...] * jax.lax.rsqrt(var + EPS)
        shift = be[...] - mean * scale
        h = (z * scale + shift).astype(compute_dtype)
    w, b = p[i], p[i + 1]
    z = jnp.dot(h, w[...], preferred_element_type=jnp.float32)
    o_ref[...] = (z + b[...]).astype(o_ref.dtype)


def _linear_relu_bn_kernel(mask_ref, x_ref, w_ref, b_ref, g_ref, be_ref, o_ref,
                           *, real_b):
    """Tiled path: Linear (MXU, f32 acc) -> ReLU -> BatchNorm1d (train stats)."""
    z = jnp.dot(x_ref[...], w_ref[...], preferred_element_type=jnp.float32)
    z = jnp.maximum(z + b_ref[...], 0.0)
    m = mask_ref[...]
    inv_b = jnp.float32(1.0 / real_b)
    zm = z * m
    mean = jnp.sum(zm, axis=0, keepdims=True) * inv_b
    d = (zm - mean) * m
    var = jnp.sum(d * d, axis=0, keepdims=True) * inv_b
    scale = g_ref[...] * jax.lax.rsqrt(var + EPS)
    shift = be_ref[...] - mean * scale
    o_ref[...] = (z * scale + shift).astype(o_ref.dtype)


def _linear_kernel(x_ref, w_ref, b_ref, o_ref):
    z = jnp.dot(x_ref[...], w_ref[...], preferred_element_type=jnp.float32)
    o_ref[...] = (z + b_ref[...]).astype(o_ref.dtype)


# --------------------------- tiled fallback path ------------------------------


def _choose_tile_n(n_pad, k_pad, b_pad, w_itemsize, out_itemsize, budget):
    """Largest lane-dense N tile whose whole working set (resident activation
    block, double-buffered weight + output tiles, f32 BN temporaries) fits the
    budget.  Prefers >=2 tiles so the 'parallel' axis splits across v7x's TCs."""
    def working_set(t):
        return (2 * b_pad * k_pad * w_itemsize      # activation block (double-buffered)
                + 2 * k_pad * t * w_itemsize        # weight tile (double-buffered)
                + 2 * b_pad * t * out_itemsize      # output tile (double-buffered)
                + 3 * b_pad * t * 4                 # f32 z / masked / centered temps
                + 8 * t * 4 + b_pad * 4)            # bias/gamma/beta tiles + mask

    fits = []
    t = _LANE
    while t <= min(_MAX_TILE_N, n_pad):
        if n_pad % t == 0 and working_set(t) <= budget:
            fits.append(t)
        t *= 2
    if not fits:
        # TODO(synk): add K-axis grid tiling (f32 acc scratch + pl.when epilogue)
        # for very large fan_in where even a 128-lane full-K tile busts the budget.
        return _LANE
    multi = [t for t in fits if t < n_pad]          # keep >=2 tiles when possible
    return max(multi) if multi else max(fits)


def _tiled_layer(h, mask, w_p, b_p, g_p, be_p, *, real_b, out_dtype, budget):
    b_pad, k_pad = h.shape
    n_pad = w_p.shape[1]
    w_itemsize = jnp.dtype(w_p.dtype).itemsize
    out_itemsize = jnp.dtype(out_dtype).itemsize
    tn = _choose_tile_n(n_pad, k_pad, b_pad, w_itemsize, out_itemsize, budget)
    n_tiles = n_pad // tn
    fuse_bn = g_p is not None

    vec_spec = pl.BlockSpec((1, tn), lambda j: (0, j))
    act_spec = pl.BlockSpec((b_pad, k_pad), lambda j: (0, 0))
    w_spec = pl.BlockSpec((k_pad, tn), lambda j: (0, j))

    if fuse_bn:
        kernel = functools.partial(_linear_relu_bn_kernel, real_b=real_b)
        in_specs = [pl.BlockSpec((b_pad, 1), lambda j: (0, 0)),
                    act_spec, w_spec, vec_spec, vec_spec, vec_spec]
        args = (mask, h, w_p, b_p, g_p, be_p)
        transcendentals = n_pad
    else:
        kernel = _linear_kernel
        in_specs = [act_spec, w_spec, vec_spec]
        args = (h, w_p, b_p)
        transcendentals = 0

    cost = pl.CostEstimate(
        flops=2 * b_pad * k_pad * n_pad,
        transcendentals=transcendentals,
        bytes_accessed=(h.size * h.dtype.itemsize + w_p.size * w_itemsize
                        + b_pad * n_pad * out_itemsize),
    )

    return pl.pallas_call(
        kernel,
        out_shape=jax.ShapeDtypeStruct((b_pad, n_pad), out_dtype),
        grid=(n_tiles,),
        in_specs=in_specs,
        out_specs=pl.BlockSpec((b_pad, tn), lambda j: (0, j)),
        compiler_params=pltpu.CompilerParams(
            dimension_semantics=("parallel",),
            vmem_limit_bytes=budget,
        ),
        cost_estimate=cost,
    )(*args)


# ------------------------------ fused path ------------------------------------


def _fused_working_set_bytes(x_p, prepared):
    b_pad = x_p.shape[0]
    total = x_p.size * x_p.dtype.itemsize + b_pad * 4       # x + row mask
    max_np = x_p.shape[1]
    for (w, b, g, be) in prepared["layers"]:
        total += sum(a.size * a.dtype.itemsize for a in (w, b, g, be))
        max_np = max(max_np, w.shape[1])
    w_out, b_out = prepared["out"]
    total += w_out.size * w_out.dtype.itemsize + b_out.size * 4
    total += b_pad * w_out.shape[1] * 4                      # f32 output
    total += 4 * b_pad * max_np * 4                          # f32 temporaries (conservative)
    return total


def _fused_forward(x_p, mask, prepared, real_b, budget):
    compute_dtype = prepared["compute_dtype"]
    b_pad = x_p.shape[0]
    layers = prepared["layers"]
    w_out, b_out = prepared["out"]
    n_out_pad = w_out.shape[1]

    args = [mask, x_p]
    flops = 0
    bytes_accessed = x_p.size * x_p.dtype.itemsize
    for (w, b, g, be) in layers:
        args += [w, b, g, be]
        flops += 2 * b_pad * w.shape[0] * w.shape[1]
        bytes_accessed += sum(a.size * a.dtype.itemsize for a in (w, b, g, be))
    args += [w_out, b_out]
    flops += 2 * b_pad * w_out.shape[0] * n_out_pad
    bytes_accessed += (w_out.size * w_out.dtype.itemsize
                       + b_pad * n_out_pad * 4)

    kernel = functools.partial(_fused_mlp_kernel, real_b=real_b,
                               n_bn=len(layers), compute_dtype=compute_dtype)

    return pl.pallas_call(
        kernel,
        out_shape=jax.ShapeDtypeStruct((b_pad, n_out_pad), jnp.float32),
        compiler_params=pltpu.CompilerParams(vmem_limit_bytes=budget),
        cost_estimate=pl.CostEstimate(
            flops=flops,
            transcendentals=sum(w.shape[1] for (w, _, _, _) in layers),
            bytes_accessed=bytes_accessed),
    )(*args)


# ------------------------------- forward --------------------------------------


def mlp_forward(x, prepared, *, force_tiled=False):
    """Forward pass of MLP (5x [Linear -> ReLU -> BatchNorm1d(train)] -> Linear).
    `prepared` comes from prepare_params() (one-time pad + cast)."""
    compute_dtype = prepared["compute_dtype"]
    real_b, in_dim = x.shape
    assert in_dim == prepared["input_dim"], (in_dim, prepared["input_dim"])
    b_pad = _round_up(max(real_b, 1), _SUBLANE)
    k0_pad = prepared["layers"][0][0].shape[0]

    x_p = jnp.zeros((b_pad, k0_pad), compute_dtype).at[
        :real_b, :in_dim].set(x.astype(compute_dtype))
    mask = (jnp.arange(b_pad) < real_b).astype(jnp.float32).reshape(b_pad, 1)

    budget = _vmem_budget_bytes()
    use_fused = (not force_tiled
                 and _fused_working_set_bytes(x_p, prepared) <= int(budget * 0.8))

    if use_fused:
        out = _fused_forward(x_p, mask, prepared, real_b, budget)
    else:
        h = x_p
        for (w, b, g, be) in prepared["layers"]:
            h = _tiled_layer(h, mask, w, b, g, be, real_b=real_b,
                             out_dtype=compute_dtype, budget=budget)
        w, b = prepared["out"]
        out = _tiled_layer(h, None, w, b, None, None, real_b=real_b,
                           out_dtype=jnp.float32, budget=budget)
    return out[:real_b, :prepared["output_dim"]]


# ------------------------------ reference -------------------------------------


def mlp_reference(x, params, compute_dtype=_COMPUTE_DTYPE):
    """Pure-JAX reference mirroring the kernel dtype path (bf16 matmul operands,
    f32 accumulation/statistics, bf16 inter-layer activations)."""
    def cast(a):
        return a.astype(compute_dtype).astype(jnp.float32)

    h = x.astype(jnp.float32)
    idx = 0
    for _ in range(5):
        w, b, g, be = params[idx:idx + 4]
        idx += 4
        z = jnp.maximum(cast(h) @ cast(w) + b, 0.0)
        mean = jnp.mean(z, axis=0, keepdims=True)
        var = jnp.mean((z - mean) ** 2, axis=0, keepdims=True)
        scale = g * jax.lax.rsqrt(var + EPS)
        shift = be - mean * scale
        h = z * scale + shift
    w, b = params[idx:idx + 2]
    return cast(h) @ cast(w) + b


# -------------------------------- main -----------------------------------------


if __name__ == "__main__":
    # Batch deliberately not a multiple of 8 to exercise the padded-row masking.
    batch, input_dim, hidden_dim, output_dim = 10, 16, 32, 8
    key = jax.random.PRNGKey(0)
    kx, kp = jax.random.split(key)
    x = jax.random.normal(kx, (batch, input_dim), dtype=jnp.float32)
    params = init_params(kp, input_dim, hidden_dim, output_dim)

    prepared = prepare_params(params)      # one-time pad + bf16 cast (hoisted)
    ref = mlp_reference(x, params)

    out_fused = jax.block_until_ready(mlp_forward(x, prepared))
    out_tiled = jax.block_until_ready(mlp_forward(x, prepared, force_tiled=True))

    for name, out in (("fused", out_fused), ("tiled", out_tiled)):
        assert out.shape == (batch, output_dim), (name, out.shape)
        assert bool(jnp.all(jnp.isfinite(out))), f"{name}: non-finite output"
        max_err = float(jnp.max(jnp.abs(out - ref)))
        # bf16 matmul operands + f32 accumulation on both sides; tolerance
        # covers accumulation-order / bf16 rounding differences.
        assert jnp.allclose(out, ref, atol=2e-2, rtol=2e-2), \
            f"{name} mismatch: {max_err}"
    print("KERNEL_OK")
</pallas_src>

<mosaic_0001>
module attributes {stable_mosaic.version = 11 : i64} {
  func.func @_fused_mlp_kernel(%arg0: memref<16x1xf32, #tpu.memory_space<vmem>>, %arg1: memref<16x128xbf16, #tpu.memory_space<vmem>>, %arg2: memref<128x128xbf16, #tpu.memory_space<vmem>>, %arg3: memref<1x128xf32, #tpu.memory_space<vmem>>, %arg4: memref<1x128xf32, #tpu.memory_space<vmem>>, %arg5: memref<1x128xf32, #tpu.memory_space<vmem>>, %arg6: memref<128x128xbf16, #tpu.memory_space<vmem>>, %arg7: memref<1x128xf32, #tpu.memory_space<vmem>>, %arg8: memref<1x128xf32, #tpu.memory_space<vmem>>, %arg9: memref<1x128xf32, #tpu.memory_space<vmem>>, %arg10: memref<128x128xbf16, #tpu.memory_space<vmem>>, %arg11: memref<1x128xf32, #tpu.memory_space<vmem>>, %arg12: memref<1x128xf32, #tpu.memory_space<vmem>>, %arg13: memref<1x128xf32, #tpu.memory_space<vmem>>, %arg14: memref<128x128xbf16, #tpu.memory_space<vmem>>, %arg15: memref<1x128xf32, #tpu.memory_space<vmem>>, %arg16: memref<1x128xf32, #tpu.memory_space<vmem>>, %arg17: memref<1x128xf32, #tpu.memory_space<vmem>>, %arg18: memref<128x128xbf16, #tpu.memory_space<vmem>>, %arg19: memref<1x128xf32, #tpu.memory_space<vmem>>, %arg20: memref<1x128xf32, #tpu.memory_space<vmem>>, %arg21: memref<1x128xf32, #tpu.memory_space<vmem>>, %arg22: memref<128x128xbf16, #tpu.memory_space<vmem>>, %arg23: memref<1x128xf32, #tpu.memory_space<vmem>>, %arg24: memref<16x128xf32, #tpu.memory_space<vmem>>) attributes {dimension_semantics = [], scalar_prefetch = 0 : i64, scratch_operands = 0 : i64, tpu.core_type = #tpu.core_type<tc>} {
    %c0 = arith.constant 0 : index
    %c0_0 = arith.constant 0 : index
    %0 = vector.load %arg0[%c0, %c0_0] : memref<16x1xf32, #tpu.memory_space<vmem>>, vector<16x1xf32>
    %c0_1 = arith.constant 0 : index
    %c0_2 = arith.constant 0 : index
    %1 = vector.load %arg1[%c0_1, %c0_2] : memref<16x128xbf16, #tpu.memory_space<vmem>>, vector<16x128xbf16>
    %c0_3 = arith.constant 0 : index
    %c0_4 = arith.constant 0 : index
    %2 = vector.load %arg2[%c0_3, %c0_4] : memref<128x128xbf16, #tpu.memory_space<vmem>>, vector<128x128xbf16>
    %cst = arith.constant dense<0.000000e+00> : vector<16x128xf32>
    %3 = tpu.matmul %1, %2, %cst {dimension_numbers = #tpu.dot_dimension_numbers<[1], [0], [0], [1], [0, 0, 1, 1], [], []>} : vector<16x128xbf16>, vector<128x128xbf16>, vector<16x128xf32> -> vector<16x128xf32>
    %c0_5 = arith.constant 0 : index
    %c0_6 = arith.constant 0 : index
    %4 = vector.load %arg3[%c0_5, %c0_6] : memref<1x128xf32, #tpu.memory_space<vmem>>, vector<1x128xf32>
    %5 = vector.broadcast %4 : vector<1x128xf32> to vector<16x128xf32>
    %6 = arith.addf %3, %5 : vector<16x128xf32>
    %cst_7 = arith.constant 0.000000e+00 : f32
    %7 = vector.broadcast %cst_7 : f32 to vector<16x128xf32>
    %8 = arith.maximumf %6, %7 : vector<16x128xf32>
    %9 = vector.broadcast %0 : vector<16x1xf32> to vector<16x128xf32>
    %10 = arith.mulf %8, %9 : vector<16x128xf32>
    %cst_8 = arith.constant dense<0.000000e+00> : vector<128xf32>
    %11 = vector.multi_reduction <add>, %10, %cst_8 [0] : vector<16x128xf32> to vector<128xf32>
    %12 = vector.shape_cast %11 : vector<128xf32> to vector<1x128xf32>
    %cst_9 = arith.constant 1.000000e-01 : f32
    %13 = vector.broadcast %cst_9 : f32 to vector<1x128xf32>
    %14 = arith.mulf %12, %13 : vector<1x128xf32>
    %15 = vector.broadcast %14 : vector<1x128xf32> to vector<16x128xf32>
    %16 = arith.subf %10, %15 : vector<16x128xf32>
    %17 = vector.broadcast %0 : vector<16x1xf32> to vector<16x128xf32>
    %18 = arith.mulf %16, %17 : vector<16x128xf32>
    %19 = arith.mulf %18, %18 : vector<16x128xf32>
    %cst_10 = arith.constant dense<0.000000e+00> : vector<128xf32>
    %20 = vector.multi_reduction <add>, %19, %cst_10 [0] : vector<16x128xf32> to vector<128xf32>
    %21 = vector.shape_cast %20 : vector<128xf32> to vector<1x128xf32>
    %cst_11 = arith.constant 1.000000e-01 : f32
    %22 = vector.broadcast %cst_11 : f32 to vector<1x128xf32>
    %23 = arith.mulf %21, %22 : vector<1x128xf32>
    %c0_12 = arith.constant 0 : index
    %c0_13 = arith.constant 0 : index
    %24 = vector.load %arg4[%c0_12, %c0_13] : memref<1x128xf32, #tpu.memory_space<vmem>>, vector<1x128xf32>
    %cst_14 = arith.constant 9.99999974E-6 : f32
    %25 = vector.broadcast %cst_14 : f32 to vector<1x128xf32>
    %26 = arith.addf %23, %25 : vector<1x128xf32>
    %27 = math.rsqrt %26 : vector<1x128xf32>
    %28 = arith.mulf %24, %27 : vector<1x128xf32>
    %c0_15 = arith.constant 0 : index
    %c0_16 = arith.constant 0 : index
    %29 = vector.load %arg5[%c0_15, %c0_16] : memref<1x128xf32, #tpu.memory_space<vmem>>, vector<1x128xf32>
    %30 = arith.mulf %14, %28 : vector<1x128xf32>
    %31 = arith.subf %29, %30 : vector<1x128xf32>
    %32 = vector.broadcast %28 : vector<1x128xf32> to vector<16x128xf32>
    %33 = arith.mulf %8, %32 : vector<16x128xf32>
    %34 = vector.broadcast %31 : vector<1x128xf32> to vector<16x128xf32>
    %35 = arith.addf %33, %34 : vector<16x128xf32>
    %36 = arith.truncf %35 : vector<16x128xf32> to vector<16x128xbf16>
    %c0_17 = arith.constant 0 : index
    %c0_18 = arith.constant 0 : index
    %37 = vector.load %arg6[%c0_17, %c0_18] : memref<128x128xbf16, #tpu.memory_space<vmem>>, vector<128x128xbf16>
    %cst_19 = arith.constant dense<0.000000e+00> : vector<16x128xf32>
    %38 = tpu.matmul %36, %37, %cst_19 {dimension_numbers = #tpu.dot_dimension_numbers<[1], [0], [0], [1], [0, 0, 1, 1], [], []>} : vector<16x128xbf16>, vector<128x128xbf16>, vector<16x128xf32> -> vector<16x128xf32>
    %c0_20 = arith.constant 0 : index
    %c0_21 = arith.constant 0 : index
    %39 = vector.load %arg7[%c0_20, %c0_21] : memref<1x128xf32, #tpu.memory_space<vmem>>, vector<1x128xf32>
    %40 = vector.broadcast %39 : vector<1x128xf32> to vector<16x128xf32>
    %41 = arith.addf %38, %40 : vector<16x128xf32>
    %cst_22 = arith.constant 0.000000e+00 : f32
    %42 = vector.broadcast %cst_22 : f32 to vector<16x128xf32>
    %43 = arith.maximumf %41, %42 : vector<16x128xf32>
    %44 = vector.broadcast %0 : vector<16x1xf32> to vector<16x128xf32>
    %45 = arith.mulf %43, %44 : vector<16x128xf32>
    %cst_23 = arith.constant dense<0.000000e+00> : vector<128xf32>
    %46 = vector.multi_reduction <add>, %45, %cst_23 [0] : vector<16x128xf32> to vector<128xf32>
    %47 = vector.shape_cast %46 : vector<128xf32> to vector<1x128xf32>
    %cst_24 = arith.constant 1.000000e-01 : f32
    %48 = vector.broadcast %cst_24 : f32 to vector<1x128xf32>
    %49 = arith.mulf %47, %48 : vector<1x128xf32>
    %50 = vector.broadcast %49 : vector<1x128xf32> to vector<16x128xf32>
    %51 = arith.subf %45, %50 : vector<16x128xf32>
    %52 = vector.broadcast %0 : vector<16x1xf32> to vector<16x128xf32>
    %53 = arith.mulf %51, %52 : vector<16x128xf32>
    %54 = arith.mulf %53, %53 : vector<16x128xf32>
    %cst_25 = arith.constant dense<0.000000e+00> : vector<128xf32>
    %55 = vector.multi_reduction <add>, %54, %cst_25 [0] : vector<16x128xf32> to vector<128xf32>
    %56 = vector.shape_cast %55 : vector<128xf32> to vector<1x128xf32>
    %cst_26 = arith.constant 1.000000e-01 : f32
    %57 = vector.broadcast %cst_26 : f32 to vector<1x128xf32>
    %58 = arith.mulf %56, %57 : vector<1x128xf32>
    %c0_27 = arith.constant 0 : index
    %c0_28 = arith.constant 0 : index
    %59 = vector.load %arg8[%c0_27, %c0_28] : memref<1x128xf32, #tpu.memory_space<vmem>>, vector<1x128xf32>
    %cst_29 = arith.constant 9.99999974E-6 : f32
    %60 = vector.broadcast %cst_29 : f32 to vector<1x128xf32>
    %61 = arith.addf %58, %60 : vector<1x128xf32>
    %62 = math.rsqrt %61 : vector<1x128xf32>
    %63 = arith.mulf %59, %62 : vector<1x128xf32>
    %c0_30 = arith.constant 0 : index
    %c0_31 = arith.constant 0 : index
    %64 = vector.load %arg9[%c0_30, %c0_31] : memref<1x128xf32, #tpu.memory_space<vmem>>, vector<1x128xf32>
    %65 = arith.mulf %49, %63 : vector<1x128xf32>
    %66 = arith.subf %64, %65 : vector<1x128xf32>
    %67 = vector.broadcast %63 : vector<1x128xf32> to vector<16x128xf32>
    %68 = arith.mulf %43, %67 : vector<16x128xf32>
    %69 = vector.broadcast %66 : vector<1x128xf32> to vector<16x128xf32>
    %70 = arith.addf %68, %69 : vector<16x128xf32>
    %71 = arith.truncf %70 : vector<16x128xf32> to vector<16x128xbf16>
    %c0_32 = arith.constant 0 : index
    %c0_33 = arith.constant 0 : index
    %72 = vector.load %arg10[%c0_32, %c0_33] : memref<128x128xbf16, #tpu.memory_space<vmem>>, vector<128x128xbf16>
    %cst_34 = arith.constant dense<0.000000e+00> : vector<16x128xf32>
    %73 = tpu.matmul %71, %72, %cst_34 {dimension_numbers = #tpu.dot_dimension_numbers<[1], [0], [0], [1], [0, 0, 1, 1], [], []>} : vector<16x128xbf16>, vector<128x128xbf16>, vector<16x128xf32> -> vector<16x128xf32>
    %c0_35 = arith.constant 0 : index
    %c0_36 = arith.constant 0 : index
    %74 = vector.load %arg11[%c0_35, %c0_36] : memref<1x128xf32, #tpu.memory_space<vmem>>, vector<1x128xf32>
    %75 = vector.broadcast %74 : vector<1x128xf32> to vector<16x128xf32>
    %76 = arith.addf %73, %75 : vector<16x128xf32>
    %cst_37 = arith.constant 0.000000e+00 : f32
    %77 = vector.broadcast %cst_37 : f32 to vector<16x128xf32>
    %78 = arith.maximumf %76, %77 : vector<16x128xf32>
    %79 = vector.broadcast %0 : vector<16x1xf32> to vector<16x128xf32>
    %80 = arith.mulf %78, %79 : vector<16x128xf32>
    %cst_38 = arith.constant dense<0.000000e+00> : vector<128xf32>
    %81 = vector.multi_reduction <add>, %80, %cst_38 [0] : vector<16x128xf32> to vector<128xf32>
    %82 = vector.shape_cast %81 : vector<128xf32> to vector<1x128xf32>
    %cst_39 = arith.constant 1.000000e-01 : f32
    %83 = vector.broadcast %cst_39 : f32 to vector<1x128xf32>
    %84 = arith.mulf %82, %83 : vector<1x128xf32>
    %85 = vector.broadcast %84 : vector<1x128xf32> to vector<16x128xf32>
    %86 = arith.subf %80, %85 : vector<16x128xf32>
    %87 = vector.broadcast %0 : vector<16x1xf32> to vector<16x128xf32>
    %88 = arith.mulf %86, %87 : vector<16x128xf32>
    %89 = arith.mulf %88, %88 : vector<16x128xf32>
    %cst_40 = arith.constant dense<0.000000e+00> : vector<128xf32>
    %90 = vector.multi_reduction <add>, %89, %cst_40 [0] : vector<16x128xf32> to vector<128xf32>
    %91 = vector.shape_cast %90 : vector<128xf32> to vector<1x128xf32>
    %cst_41 = arith.constant 1.000000e-01 : f32
    %92 = vector.broadcast %cst_41 : f32 to vector<1x128xf32>
    %93 = arith.mulf %91, %92 : vector<1x128xf32>
    %c0_42 = arith.constant 0 : index
    %c0_43 = arith.constant 0 : index
    %94 = vector.load %arg12[%c0_42, %c0_43] : memref<1x128xf32, #tpu.memory_space<vmem>>, vector<1x128xf32>
    %cst_44 = arith.constant 9.99999974E-6 : f32
    %95 = vector.broadcast %cst_44 : f32 to vector<1x128xf32>
    %96 = arith.addf %93, %95 : vector<1x128xf32>
    %97 = math.rsqrt %96 : vector<1x128xf32>
    %98 = arith.mulf %94, %97 : vector<1x128xf32>
    %c0_45 = arith.constant 0 : index
    %c0_46 = arith.constant 0 : index
    %99 = vector.load %arg13[%c0_45, %c0_46] : memref<1x128xf32, #tpu.memory_space<vmem>>, vector<1x128xf32>
    %100 = arith.mulf %84, %98 : vector<1x128xf32>
    %101 = arith.subf %99, %100 : vector<1x128xf32>
    %102 = vector.broadcast %98 : vector<1x128xf32> to vector<16x128xf32>
    %103 = arith.mulf %78, %102 : vector<16x128xf32>
    %104 = vector.broadcast %101 : vector<1x128xf32> to vector<16x128xf32>
    %105 = arith.addf %103, %104 : vector<16x128xf32>
    %106 = arith.truncf %105 : vector<16x128xf32> to vector<16x128xbf16>
    %c0_47 = arith.constant 0 : index
    %c0_48 = arith.constant 0 : index
    %107 = vector.load %arg14[%c0_47, %c0_48] : memref<128x128xbf16, #tpu.memory_space<vmem>>, vector<128x128xbf16>
    %cst_49 = arith.constant dense<0.000000e+00> : vector<16x128xf32>
    %108 = tpu.matmul %106, %107, %cst_49 {dimension_numbers = #tpu.dot_dimension_numbers<[1], [0], [0], [1], [0, 0, 1, 1], [], []>} : vector<16x128xbf16>, vector<128x128xbf16>, vector<16x128xf32> -> vector<16x128xf32>
    %c0_50 = arith.constant 0 : index
    %c0_51 = arith.constant 0 : index
    %109 = vector.load %arg15[%c0_50, %c0_51] : memref<1x128xf32, #tpu.memory_space<vmem>>, vector<1x128xf32>
    %110 = vector.broadcast %109 : vector<1x128xf32> to vector<16x128xf32>
    %111 = arith.addf %108, %110 : vector<16x128xf32>
    %cst_52 = arith.constant 0.000000e+00 : f32
    %112 = vector.broadcast %cst_52 : f32 to vector<16x128xf32>
    %113 = arith.maximumf %111, %112 : vector<16x128xf32>
    %114 = vector.broadcast %0 : vector<16x1xf32> to vector<16x128xf32>
    %115 = arith.mulf %113, %114 : vector<16x128xf32>
    %cst_53 = arith.constant dense<0.000000e+00> : vector<128xf32>
    %116 = vector.multi_reduction <add>, %115, %cst_53 [0] : vector<16x128xf32> to vector<128xf32>
    %117 = vector.shape_cast %116 : vector<128xf32> to vector<1x128xf32>
    %cst_54 = arith.constant 1.000000e-01 : f32
    %118 = vector.broadcast %cst_54 : f32 to vector<1x128xf32>
    %119 = arith.mulf %117, %118 : vector<1x128xf32>
    %120 = vector.broadcast %119 : vector<1x128xf32> to vector<16x128xf32>
    %121 = arith.subf %115, %120 : vector<16x128xf32>
    %122 = vector.broadcast %0 : vector<16x1xf32> to vector<16x128xf32>
    %123 = arith.mulf %121, %122 : vector<16x128xf32>
    %124 = arith.mulf %123, %123 : vector<16x128xf32>
    %cst_55 = arith.constant dense<0.000000e+00> : vector<128xf32>
    %125 = vector.multi_reduction <add>, %124, %cst_55 [0] : vector<16x128xf32> to vector<128xf32>
    %126 = vector.shape_cast %125 : vector<128xf32> to vector<1x128xf32>
    %cst_56 = arith.constant 1.000000e-01 : f32
    %127 = vector.broadcast %cst_56 : f32 to vector<1x128xf32>
    %128 = arith.mulf %126, %127 : vector<1x128xf32>
    %c0_57 = arith.constant 0 : index
    %c0_58 = arith.constant 0 : index
    %129 = vector.load %arg16[%c0_57, %c0_58] : memref<1x128xf32, #tpu.memory_space<vmem>>, vector<1x128xf32>
    %cst_59 = arith.constant 9.99999974E-6 : f32
    %130 = vector.broadcast %cst_59 : f32 to vector<1x128xf32>
    %131 = arith.addf %128, %130 : vector<1x128xf32>
    %132 = math.rsqrt %131 : vector<1x128xf32>
    %133 = arith.mulf %129, %132 : vector<1x128xf32>
    %c0_60 = arith.constant 0 : index
    %c0_61 = arith.constant 0 : index
    %134 = vector.load %arg17[%c0_60, %c0_61] : memref<1x128xf32, #tpu.memory_space<vmem>>, vector<1x128xf32>
    %135 = arith.mulf %119, %133 : vector<1x128xf32>
    %136 = arith.subf %134, %135 : vector<1x128xf32>
    %137 = vector.broadcast %133 : vector<1x128xf32> to vector<16x128xf32>
    %138 = arith.mulf %113, %137 : vector<16x128xf32>
    %139 = vector.broadcast %136 : vector<1x128xf32> to vector<16x128xf32>
    %140 = arith.addf %138, %139 : vector<16x128xf32>
    %141 = arith.truncf %140 : vector<16x128xf32> to vector<16x128xbf16>
    %c0_62 = arith.constant 0 : index
    %c0_63 = arith.constant 0 : index
    %142 = vector.load %arg18[%c0_62, %c0_63] : memref<128x128xbf16, #tpu.memory_space<vmem>>, vector<128x128xbf16>
    %cst_64 = arith.constant dense<0.000000e+00> : vector<16x128xf32>
    %143 = tpu.matmul %141, %142, %cst_64 {dimension_numbers = #tpu.dot_dimension_numbers<[1], [0], [0], [1], [0, 0, 1, 1], [], []>} : vector<16x128xbf16>, vector<128x128xbf16>, vector<16x128xf32> -> vector<16x128xf32>
    %c0_65 = arith.constant 0 : index
    %c0_66 = arith.constant 0 : index
    %144 = vector.load %arg19[%c0_65, %c0_66] : memref<1x128xf32, #tpu.memory_space<vmem>>, vector<1x128xf32>
    %145 = vector.broadcast %144 : vector<1x128xf32> to vector<16x128xf32>
    %146 = arith.addf %143, %145 : vector<16x128xf32>
    %cst_67 = arith.constant 0.000000e+00 : f32
    %147 = vector.broadcast %cst_67 : f32 to vector<16x128xf32>
    %148 = arith.maximumf %146, %147 : vector<16x128xf32>
    %149 = vector.broadcast %0 : vector<16x1xf32> to vector<16x128xf32>
    %150 = arith.mulf %148, %149 : vector<16x128xf32>
    %cst_68 = arith.constant dense<0.000000e+00> : vector<128xf32>
    %151 = vector.multi_reduction <add>, %150, %cst_68 [0] : vector<16x128xf32> to vector<128xf32>
    %152 = vector.shape_cast %151 : vector<128xf32> to vector<1x128xf32>
    %cst_69 = arith.constant 1.000000e-01 : f32
    %153 = vector.broadcast %cst_69 : f32 to vector<1x128xf32>
    %154 = arith.mulf %152, %153 : vector<1x128xf32>
    %155 = vector.broadcast %154 : vector<1x128xf32> to vector<16x128xf32>
    %156 = arith.subf %150, %155 : vector<16x128xf32>
    %157 = vector.broadcast %0 : vector<16x1xf32> to vector<16x128xf32>
    %158 = arith.mulf %156, %157 : vector<16x128xf32>
    %159 = arith.mulf %158, %158 : vector<16x128xf32>
    %cst_70 = arith.constant dense<0.000000e+00> : vector<128xf32>
    %160 = vector.multi_reduction <add>, %159, %cst_70 [0] : vector<16x128xf32> to vector<128xf32>
    %161 = vector.shape_cast %160 : vector<128xf32> to vector<1x128xf32>
    %cst_71 = arith.constant 1.000000e-01 : f32
    %162 = vector.broadcast %cst_71 : f32 to vector<1x128xf32>
    %163 = arith.mulf %161, %162 : vector<1x128xf32>
    %c0_72 = arith.constant 0 : index
    %c0_73 = arith.constant 0 : index
    %164 = vector.load %arg20[%c0_72, %c0_73] : memref<1x128xf32, #tpu.memory_space<vmem>>, vector<1x128xf32>
    %cst_74 = arith.constant 9.99999974E-6 : f32
    %165 = vector.broadcast %cst_74 : f32 to vector<1x128xf32>
    %166 = arith.addf %163, %165 : vector<1x128xf32>
    %167 = math.rsqrt %166 : vector<1x128xf32>
    %168 = arith.mulf %164, %167 : vector<1x128xf32>
    %c0_75 = arith.constant 0 : index
    %c0_76 = arith.constant 0 : index
    %169 = vector.load %arg21[%c0_75, %c0_76] : memref<1x128xf32, #tpu.memory_space<vmem>>, vector<1x128xf32>
    %170 = arith.mulf %154, %168 : vector<1x128xf32>
    %171 = arith.subf %169, %170 : vector<1x128xf32>
    %172 = vector.broadcast %168 : vector<1x128xf32> to vector<16x128xf32>
    %173 = arith.mulf %148, %172 : vector<16x128xf32>
    %174 = vector.broadcast %171 : vector<1x128xf32> to vector<16x128xf32>
    %175 = arith.addf %173, %174 : vector<16x128xf32>
    %176 = arith.truncf %175 : vector<16x128xf32> to vector<16x128xbf16>
    %c0_77 = arith.constant 0 : index
    %c0_78 = arith.constant 0 : index
    %177 = vector.load %arg22[%c0_77, %c0_78] : memref<128x128xbf16, #tpu.memory_space<vmem>>, vector<128x128xbf16>
    %cst_79 = arith.constant dense<0.000000e+00> : vector<16x128xf32>
    %178 = tpu.matmul %176, %177, %cst_79 {dimension_numbers = #tpu.dot_dimension_numbers<[1], [0], [0], [1], [0, 0, 1, 1], [], []>} : vector<16x128xbf16>, vector<128x128xbf16>, vector<16x128xf32> -> vector<16x128xf32>
    %c0_80 = arith.constant 0 : index
    %c0_81 = arith.constant 0 : index
    %179 = vector.load %arg23[%c0_80, %c0_81] : memref<1x128xf32, #tpu.memory_space<vmem>>, vector<1x128xf32>
    %180 = vector.broadcast %179 : vector<1x128xf32> to vector<16x128xf32>
    %181 = arith.addf %178, %180 : vector<16x128xf32>
    %c0_82 = arith.constant 0 : index
    %c0_83 = arith.constant 0 : index
    %182 = vector.load %arg24[%c0_82, %c0_83] : memref<16x128xf32, #tpu.memory_space<vmem>>, vector<16x128xf32>
    tpu.vector_store %arg24[%c0_82, %c0_83], %181 {strides = array<i32>} : memref<16x128xf32, #tpu.memory_space<vmem>>, vector<16x128xf32>,
    return
  }
}

</mosaic_0001>

<bundles_post_ra>
// kernel: tpu_custom_call.1
= control target key start
LH: loop header
LB: loop body
LE: loop exit
PB: predicated region body
PF: predicated region fallthrough
CT: control target
= control target key end

     0   :  { %s1909_s0 = inlined_call_operand.vmem [shape: f32[16,1], index: 0, kind: input, shape index: {}]   ;;  %s1910_s1 = inlined_call_operand.vmem [shape: bf16[16,128], index: 1, kind: input, shape index: {}]   ;;  %s1911_s2 = inlined_call_operand.hbm [shape: bf16[128,128], index: 2, kind: input, shape index: {}]   ;;  %s1912_s3 = inlined_call_operand.vmem [shape: f32[1,128], index: 3, kind: input, shape index: {}]   ;;  %s1913_s4 = inlined_call_operand.vmem [shape: f32[1,128], index: 4, kind: input, shape index: {}]   ;;  %s1914_s5 = inlined_call_operand.vmem [shape: f32[1,128], index: 5, kind: input, shape index: {}]   ;;  %s1915_s6 = inlined_call_operand.hbm [shape: bf16[128,128], index: 6, kind: input, shape index: {}]   ;;  %s1916_s7 = inlined_call_operand.vmem [shape: f32[1,128], index: 7, kind: input, shape index: {}]   ;;  %s1917_s8 = inlined_call_operand.vmem [shape: f32[1,128], index: 8, kind: input, shape index: {}]   ;;  %s1918_s9 = inlined_call_operand.vmem [shape: f32[1,128], index: 9, kind: input, shape index: {}]   ;;  %s1919_s10 = inlined_call_operand.hbm [shape: bf16[128,128], index: 10, kind: input, shape index: {}]   ;;  %s1920_s11 = inlined_call_operand.vmem [shape: f32[1,128], index: 11, kind: input, shape index: {}]   ;;  %s1921_s12 = inlined_call_operand.vmem [shape: f32[1,128], index: 12, kind: input, shape index: {}]   ;;  %s1922_s13 = inlined_call_operand.vmem [shape: f32[1,128], index: 13, kind: input, shape index: {}]   ;;  %s1923_s14 = inlined_call_operand.hbm [shape: bf16[128,128], index: 14, kind: input, shape index: {}]   ;;  %s1924_s15 = inlined_call_operand.vmem [shape: f32[1,128], index: 15, kind: input, shape index: {}]   ;;  %s1925_s16 = inlined_call_operand.vmem [shape: f32[1,128], index: 16, kind: input, shape index: {}]   ;;  %s1926_s17 = inlined_call_operand.vmem [shape: f32[1,128], index: 17, kind: input, shape index: {}]   ;;  %s1927_s18 = inlined_call_operand.hbm [shape: bf16[128,128], index: 18, kind: input, shape index: {}]   ;;  %s1928_s19 = inlined_call_operand.vmem [shape: f32[1,128], index: 19, kind: input, shape index: {}]   ;;  %s1929_s20 = inlined_call_operand.vmem [shape: f32[1,128], index: 20, kind: input, shape index: {}]   ;;  %s1930_s21 = inlined_call_operand.vmem [shape: f32[1,128], index: 21, kind: input, shape index: {}]   ;;  %s1931_s22 = inlined_call_operand.hbm [shape: bf16[128,128], index: 22, kind: input, shape index: {}]   ;;  %s1932_s23 = inlined_call_operand.vmem [shape: f32[1,128], index: 23, kind: input, shape index: {}]   ;;  %s1933_s24 = inlined_call_operand.hbm [shape: f32[16,128], index: 24, kind: output, shape index: {}]  }
   0x1   :  { %1935 = sst [smem:[#allocation19_spill]] %s1909_s0 }
   0x2   :  { %1936 = sst [smem:[#allocation20_spill]] %s1910_s1 }
   0x3   :  { %1937 = sst [smem:[#allocation21_spill]] %s1911_s2 }
   0x4   :  { %1938 = sst [smem:[#allocation22_spill]] %s1912_s3 }
   0x5   :  { %1939 = sst [smem:[#allocation23_spill]] %s1913_s4 }
   0x6   :  { %1940 = sst [smem:[#allocation24_spill]] %s1914_s5 }
   0x7   :  { %1941 = sst [smem:[#allocation25_spill]] %s1915_s6 }
   0x8   :  { %1942 = sst [smem:[#allocation26_spill]] %s1916_s7 }
   0x9   :  { %1943 = sst [smem:[#allocation27_spill]] %s1917_s8 }
   0xa   :  { %29 = vsyncpa [#allocation3], 0 }
   0xb   :  { %30 = vsyncpa [#allocation6], 0 }
   0xc   :  { %31 = vsyncpa [#allocation9], 0 }
   0xd   :  { %32 = vsyncpa [#allocation12], 0 }
   0xe   :  { %33 = vsyncpa [#allocation4], 0  ;;  %s1578_s5 = smov [#allocation5]   ;;  %s1579_s27 = smov [#allocation8]  }
   0xf   :  { %s61_s26 = sshll.u32 %s1578_s5, 4  ;;  %s97_s28 = sshll.u32 %s1579_s27, 4  ;;  %s62_s26 = int_to_ptr.vmem [resolvable:$true] %s61_s26  ;;  %s98_s28 = int_to_ptr.vmem [resolvable:$true] %s97_s28 }
  0x10   :  { %s1436_s6 = scalar_lea.vmem %s62_s26, 1024  ;;  %p1441_p1 = scmp.lt.s32.totalorder %s62_s26, %s62_s26 }
  0x11   :  { %p1437_p0 = scmp.ne.s32.totalorder %s62_s26, %s1436_s6  ;;  %p1442_p2 = scmp.lt.s32.totalorder %s1436_s6, %s1436_s6 }
  0x13   :  { %p1443_p3 = por %p1442_p2, %p1441_p1 }
  0x15   :  { %p1444_p4 = pnand %p1443_p3, %p1437_p0 }
  0x17   :  { %1447 = shalt.err (!%p1444_p4)
}
  0x18   :  { %s1580_s2 = smov 64   ;;  %s1581_s29 = smov 4  }
  0x19   :  { %s1944_s30 = sld [smem:[#allocation25_spill]]  ;;  %s1456_s3 = scalar_lea.vmem %s98_s28, 1024 }
  0x1a   :  { %p1457_p5 = scmp.ne.s32.totalorder %s98_s28, %s1456_s3  ;;  %p1461_p6 = scmp.lt.s32.totalorder %s98_s28, %s98_s28 }
  0x1b   :  { %p1462_p7 = scmp.lt.s32.totalorder %s1456_s3, %s1456_s3 }
  0x1d   :  { %p1463_p8 = por %p1462_p7, %p1461_p6 }
  0x1f   :  { %67 = dma.hbm_to_vmem [thread:$0]  %s1944_s30, 1024, %s62_s26, [#allocation6], %s1580_s2, %s1580_s2, %s1581_s29  }
  0x20   :  { %p1464_p9 = pnand %p1463_p8, %p1457_p5 }
  0x22   :  { %1467 = shalt.err (!%p1464_p9)
}
  0x23   :  { %103 = dma.hbm_to_vmem [thread:$0]  %s1923_s14, 1024, %s98_s28, [#allocation9], %s1580_s2, %s1580_s2, %s1581_s29  }
  0x24   :  { %s1582_s4 = smov [#allocation2]   ;;  %s1583_s5 = smov [#allocation7]  }
  0x25   :  { %s43_s1 = sshll.u32 %s1582_s4, 4  ;;  %s79_s27 = sshll.u32 %s1583_s5, 4  ;;  %s44_s1 = int_to_ptr.vmem [resolvable:$true] %s43_s1  ;;  %s80_s27 = int_to_ptr.vmem [resolvable:$true] %s79_s27 }
  0x26   :  { %s1476_s26 = scalar_lea.vmem %s44_s1, 1024  ;;  %p1481_p11 = scmp.lt.s32.totalorder %s44_s1, %s44_s1 }
  0x27   :  { %p1477_p10 = scmp.ne.s32.totalorder %s44_s1, %s1476_s26  ;;  %p1482_p12 = scmp.lt.s32.totalorder %s1476_s26, %s1476_s26 }
  0x29   :  { %p1483_p13 = por %p1482_p12, %p1481_p11 }
  0x2b   :  { %p1484_p0 = pnand %p1483_p13, %p1477_p10 }
  0x2d   :  { %1487 = shalt.err (!%p1484_p0)
}
  0x2e   :  { %s1945_s7 = sld [smem:[#allocation21_spill]]  ;;  %s1496_s14 = scalar_lea.vmem %s80_s27, 1024 }
  0x2f   :  { %p1497_p1 = scmp.ne.s32.totalorder %s80_s27, %s1496_s14  ;;  %p1501_p2 = scmp.lt.s32.totalorder %s80_s27, %s80_s27 }
  0x30   :  { %p1502_p3 = scmp.lt.s32.totalorder %s1496_s14, %s1496_s14 }
  0x32   :  { %p1503_p4 = por %p1502_p3, %p1501_p2 }
  0x34   :  { %49 = dma.hbm_to_vmem [thread:$0]  %s1945_s7, 1024, %s44_s1, [#allocation3], %s1580_s2, %s1580_s2, %s1581_s29  }
  0x35   :  { %p1504_p5 = pnand %p1503_p4, %p1497_p1 }
  0x37   :  { %1507 = shalt.err (!%p1504_p5)
}
  0x38   :  { %85 = dma.hbm_to_vmem [thread:$0]  %s1919_s10, 1024, %s80_s27, [#allocation6], %s1580_s2, %s1580_s2, %s1581_s29  }
  0x39   :  { %s1584_s3 = smov [#allocation10]   ;;  %s1585_s8 = smov [#allocation11]  }
  0x3a   :  { %s115_s25 = sshll.u32 %s1584_s3, 4  ;;  %s133_s4 = sshll.u32 %s1585_s8, 4  ;;  %s116_s25 = int_to_ptr.vmem [resolvable:$true] %s115_s25  ;;  %s134_s4 = int_to_ptr.vmem [resolvable:$true] %s133_s4 }
  0x3b   :  { %s1516_s1 = scalar_lea.vmem %s116_s25, 1024  ;;  %p1521_p7 = scmp.lt.s32.totalorder %s116_s25, %s116_s25 }
  0x3c   :  { %p1517_p6 = scmp.ne.s32.totalorder %s116_s25, %s1516_s1  ;;  %p1522_p8 = scmp.lt.s32.totalorder %s1516_s1, %s1516_s1 }
  0x3e   :  { %p1523_p9 = por %p1522_p8, %p1521_p7 }
  0x40   :  { %p1524_p10 = pnand %p1523_p9, %p1517_p6 }
  0x42   :  { %1527 = shalt.err (!%p1524_p10)
}
  0x43   :  { %121 = dma.hbm_to_vmem [thread:$0]  %s1927_s18, 1024, %s116_s25, [#allocation9], %s1580_s2, %s1580_s2, %s1581_s29  }
  0x44   :  { %s1536_s10 = scalar_lea.vmem %s134_s4, 1024  ;;  %p1541_p12 = scmp.lt.s32.totalorder %s134_s4, %s134_s4 }
  0x45   :  { %p1537_p11 = scmp.ne.s32.totalorder %s134_s4, %s1536_s10  ;;  %p1542_p13 = scmp.lt.s32.totalorder %s1536_s10, %s1536_s10 }
  0x47   :  { %p1543_p0 = por %p1542_p13, %p1541_p12 }
  0x49   :  { %p1544_p1 = pnand %p1543_p0, %p1537_p11 }
  0x4b   :  { %1547 = shalt.err (!%p1544_p1)
}
  0x4c   :  { %139 = dma.hbm_to_vmem [thread:$0]  %s1931_s22, 1024, %s134_s4, [#allocation12], %s1580_s2, %s1580_s2, %s1581_s29  }
  0x4d   :  { %1568 = dma.done.wait [#allocation3], 1024  }
  0x4e   :  { %1569 = vsyncadd [#allocation3], 4294966272 }
  0x4f   :  { %1570 = dma.done.wait [#allocation6], 2048  }
  0x50   :  { %1571 = vsyncadd [#allocation6], 4294965248 }
  0x51   :  { %1572 = dma.done.wait [#allocation9], 2048  }
  0x52   :  { %1573 = vsyncadd [#allocation9], 4294965248 }
  0x53   :  { %1574 = dma.done.wait [#allocation12], 1024  }
  0x54   :  { %1575 = vsyncadd [#allocation12], 4294966272  ;;  %v1586_v0 = vmov 0.0   ;;  %vm1587_vm0 = vmmov 0   ;;  %v1588_v1 = vmov 0   ;;  %v1369_v2 = vld [vmem:[#allocation2 + $0x38] sm:$0xff]   ;;  %v327_v57 = vlaneseq }
  0x55   :  { %1234 = vmatprep.subr.bf16.mxu0 %v1586_v0  ;;  %1250 = vmatprep.mubr.msk.bf16.mxu0 %vm1587_vm0, %v1586_v0  ;;  %v1370_v3 = vld [vmem:[#allocation2 + $0x30] sm:$0xff]   ;;  %v1371_v4 = vld [vmem:[#allocation2 + $0x28] sm:$0xff]   ;;  %v1372_v5 = vld [vmem:[#allocation2 + $0x20] sm:$0xff]   ;;  %s1946_s2 = sld [smem:[#allocation19_spill]]  ;;  %s1589_s27 = smov [#allocation13]  }
  0x56   :  { %1368 = vset.pattern.permute.xlu0 %v1588_v1  ;;  %1254 = vmatprep.subr.bf16.mxu1 %v1586_v0  ;;  %v1373_v8 = vld [vmem:[#allocation2 + $0x18] sm:$0xff]   ;;  %v1374_v9 = vld [vmem:[#allocation2 + $0x10] sm:$0xff]   ;;  %v1375_v10 = vld [vmem:[#allocation2 + $0x8] sm:$0xff]   ;;  %s1947_s28 = sld [smem:[#allocation20_spill]]  ;;  %v328_v58 = vshrl.u32 %v327_v57, 7 }
  0x57   :  { %1270 = vmatprep.mubr.msk.bf16.mxu1 %vm1587_vm0, %v1586_v0  ;;  %1235 = vmatpush3.bf16.msra.mxu0 %v1369_v2  ;;  %v1376_v11 = vld [vmem:[#allocation2] sm:$0xff]   ;;  %v1378_v13 = vld [vmem:[#allocation5 + $0x38] sm:$0xff]   ;;  %v1379_v14 = vld [vmem:[#allocation5 + $0x30] sm:$0xff]   ;;  %s1948_s25 = sld [smem:[#allocation22_spill]] }
  0x58   :  { %1236 = vmatprep.subr.bf16.mxu0 %v1586_v0  ;;  %1255 = vmatpush3.bf16.msra.mxu1 %v1378_v13  ;;  %v1380_v15 = vld [vmem:[#allocation5 + $0x28] sm:$0xff]   ;;  %v1381_v16 = vld [vmem:[#allocation5 + $0x20] sm:$0xff]   ;;  %v1382_v17 = vld [vmem:[#allocation5 + $0x18] sm:$0xff]   ;;  %s1949_s1 = sld [smem:[#allocation23_spill]]  ;;  %v1800_v60 = vsub.s32 0, %v328_v58 }
  0x59   :  { %1256 = vmatprep.subr.bf16.mxu1 %v1586_v0  ;;  %v1383_v18 = vld [vmem:[#allocation5 + $0x10] sm:$0xff]   ;;  %v1384_v19 = vld [vmem:[#allocation5 + $0x8] sm:$0xff]   ;;  %v1385_v20 = vld [vmem:[#allocation5] sm:$0xff]   ;;  %s1950_s10 = sld [smem:[#allocation24_spill]] }
  0x5a   :  { %v1389_v13 = vld [vmem:[#allocation7 + $0x20] sm:$0xff]   ;;  %s1951_s18 = sld [smem:[#allocation26_spill]] }
  0x5b   :  { %1237 = vmatpush3.bf16.msra.mxu0 %v1370_v3  ;;  %v161_v6 = vld [vmem:[%s1946_s2] sm:$0xff]  ;;  %v162_v7 = vld [vmem:[%s1946_s2 + $0x8] sm:$0xff]  ;;  %s1952_s29 = sld [smem:[#allocation27_spill]] }
  0x5c   :  { %1238 = vmatprep.subr.bf16.mxu0 %v1586_v0  ;;  %287 = vperm.xlu0 %1368, %v161_v6   ;;  %v1377_v12 = vld [vmem:[%s1947_s28] sm:$0xff]  }
  0x5d   :  { %1257 = vmatpush3.bf16.msra.mxu1 %v1379_v14  ;;  %v1125_v21 = vld [vmem:[%s1948_s25] ss:$0 sm:$0xff]  ;;  %v1390_v14 = vld [vmem:[#allocation7 + $0x18] sm:$0xff]  }
  0x5e   :  { %1258 = vmatprep.subr.bf16.mxu1 %v1586_v0  ;;  %v319_v59 = vld [vmem:[%s1949_s1] sm:$0x1] }
  0x5f   :  { %1239 = vmatpush3.bf16.msra.mxu0 %v1371_v4  ;;  %v323_v63 = vld [vmem:[%s1950_s10] sm:$0x1] }
  0x60   :  { %1240 = vmatprep.subr.bf16.mxu0 %v1586_v0  ;;  %292 = vperm.xlu0 %1368, %v162_v7   ;;  %v485_v57 = vld [vmem:[%s1918_s9] sm:$0x1] }
  0x61   :  { %1259 = vmatpush3.bf16.msra.mxu1 %v1380_v15  ;;  %v1391_v15 = vld [vmem:[#allocation7 + $0x10] sm:$0xff]  }
  0x62   :  { %1260 = vmatprep.subr.bf16.mxu1 %v1586_v0 }
  0x63   :  { %1241 = vmatpush3.bf16.msra.mxu0 %v1372_v5 }
  0x64   :  { %1242 = vmatprep.subr.bf16.mxu0 %v1586_v0 }
  0x65   :  { %1261 = vmatpush3.bf16.msra.mxu1 %v1381_v16  ;;  %v1392_v16 = vld [vmem:[#allocation7 + $0x8] sm:$0xff]  }
  0x66   :  { %1262 = vmatprep.subr.bf16.mxu1 %v1586_v0 }
  0x67   :  { %1243 = vmatpush3.bf16.msra.mxu0 %v1373_v8 }
  0x68   :  { %1244 = vmatprep.subr.bf16.mxu0 %v1586_v0 }
  0x69   :  { %1263 = vmatpush3.bf16.msra.mxu1 %v1382_v17  ;;  %v1393_v17 = vld [vmem:[#allocation7] sm:$0xff]  }
  0x6a   :  { %1264 = vmatprep.subr.bf16.mxu1 %v1586_v0 }
  0x6b   :  { %1245 = vmatpush3.bf16.msra.mxu0 %v1374_v9 }
  0x6c   :  { %1246 = vmatprep.subr.bf16.mxu0 %v1586_v0 }
  0x6d   :  { %1265 = vmatpush3.bf16.msra.mxu1 %v1383_v18  ;;  %v1135_v18 = vld [vmem:[%s1951_s18] ss:$0 sm:$0xff] }
  0x6e   :  { %1266 = vmatprep.subr.bf16.mxu1 %v1586_v0 }
  0x6f   :  { %1247 = vmatpush3.bf16.msra.mxu0 %v1375_v10  ;;  %v1386_v10 = vld [vmem:[#allocation7 + $0x38] sm:$0xff]  }
  0x70   :  { %1248 = vmatprep.subr.bf16.mxu0 %v1586_v0 }
  0x71   :  { %1267 = vmatpush3.bf16.msra.mxu1 %v1384_v19 }
  0x72   :  { %1268 = vmatprep.subr.bf16.mxu1 %v1586_v0 }
  0x73   :  { %1249 = vmatpush3.bf16.msra.mxu0 %v1376_v11  ;;  %v1387_v11 = vld [vmem:[#allocation7 + $0x30] sm:$0xff]  }
  0x74   :  { %1274 = vmatprep.subr.bf16.mxu0 %v1586_v0 }
  0x75   :  { %1269 = vmatpush3.bf16.msra.mxu1 %v1385_v20 }
  0x76   :  { %1251 = vmatmul.mubr.bf16.vlgmr.msra.gmra.mxu0 %v1377_v12  ;;  %1294 = vmatprep.subr.bf16.mxu1 %v1586_v0  ;;  %v1388_v12 = vld [vmem:[#allocation7 + $0x28] sm:$0xff]  }
  0x77   :  { %1290 = vmatprep.mubr.msk.bf16.mxu0 %vm1587_vm0, %v1586_v0  ;;  %1275 = vmatpush3.bf16.msra.mxu0 %v1386_v10  ;;  %v1399_v10 = vld [vmem:[#allocation8 + $0x10] sm:$0xff]  }
  0x78   :  { %1276 = vmatprep.subr.bf16.mxu0 %v1586_v0 }
  0x7b   :  { %1277 = vmatpush3.bf16.msra.mxu0 %v1387_v11  ;;  %v1400_v11 = vld [vmem:[#allocation8 + $0x8] sm:$0xff]  }
  0x7c   :  { %1278 = vmatprep.subr.bf16.mxu0 %v1586_v0 }
  0x7f   :  { %1279 = vmatpush3.bf16.msra.mxu0 %v1388_v12  ;;  %v1401_v12 = vld [vmem:[#allocation8] sm:$0xff]  }
  0x80   :  { %1280 = vmatprep.subr.bf16.mxu0 %v1586_v0 }
  0x83   :  { %1281 = vmatpush3.bf16.msra.mxu0 %v1389_v13  ;;  %v1144_v13 = vld [vmem:[%s1920_s11] ss:$0 sm:$0xff] }
  0x84   :  { %1282 = vmatprep.subr.bf16.mxu0 %v1586_v0 }
  0x87   :  { %1283 = vmatpush3.bf16.msra.mxu0 %v1390_v14 }
  0x88   :  { %1284 = vmatprep.subr.bf16.mxu0 %v1586_v0 }
  0x8b   :  { %1285 = vmatpush3.bf16.msra.mxu0 %v1391_v15 }
  0x8c   :  { %1286 = vmatprep.subr.bf16.mxu0 %v1586_v0 }
  0x8f   :  { %1287 = vmatpush3.bf16.msra.mxu0 %v1392_v16 }
  0x90   :  { %1288 = vmatprep.subr.bf16.mxu0 %v1586_v0 }
  0x93   :  { %1289 = vmatpush3.bf16.msra.mxu0 %v1393_v17 }
  0x94   :  { %1314 = vmatprep.subr.bf16.mxu0 %v1586_v0 }
  0xd7   :  { %v1789_v24 = vpop.permute.xlu0 %287 }
  0xdb   :  { %v1791_v31 = vpop.permute.xlu0 %292 }
 0x136   :  { %v276_v22 = vpop.f32.mrf.mxu0 }
 0x137   :  { %v277_v23 = vadd.f32 %v1125_v21, %v276_v22 }
 0x138   :  { %v1252_v25 = vpop.f32.mrf.mxu0 }
 0x139   :  { %v283_v27 = vmax.f32 %v277_v23, 0.0 }
 0x13a   :  { %v279_v26 = vpop.f32.mrf.mxu0 }
 0x13b   :  { %v280_v28 = vadd.f32 %v1125_v21, %v279_v26  ;;  %v295_v32 = vmul.f32 %v1789_v24, %v283_v27 }
 0x13c   :  { %v1253_v29 = vpop.f32.mrf.mxu0 }
 0x13d   :  { %v284_v30 = vmax.f32 %v280_v28, 0.0 }
 0x13f   :  { %v296_v33 = vmul.f32 %v1791_v31, %v284_v30 }
 0x141   :  { %v297_v34 = vadd.f32 %v296_v33, %v295_v32 }
 0x143   :  { %v298_v35 = vrot.slane %v297_v34, 4 }
 0x145   :  { %v299_v36 = vadd.f32 %v298_v35, %v297_v34 }
 0x147   :  { %v300_v37 = vrot.slane %v299_v36, 2 }
 0x149   :  { %v301_v38 = vadd.f32 %v300_v37, %v299_v36 }
 0x14b   :  { %v302_v39 = vrot.slane %v301_v38, 1 }
 0x14d   :  { %v303_v40 = vadd.f32 %v302_v39, %v301_v38 }
 0x14f   :  { %v304_v41 = vmul.f32 0.1, %v303_v40 }
 0x151   :  { %v305_v42 = vsub.f32 %v295_v32, %v304_v41  ;;  %v306_v43 = vsub.f32 %v296_v33, %v304_v41 }
 0x153   :  { %v307_v44 = vmul.f32 %v305_v42, %v1789_v24  ;;  %v308_v45 = vmul.f32 %v306_v43, %v1791_v31 }
 0x155   :  { %v309_v46 = vmul.f32 %v307_v44, %v307_v44  ;;  %v310_v47 = vmul.f32 %v308_v45, %v308_v45 }
 0x157   :  { %v311_v48 = vadd.f32 %v310_v47, %v309_v46 }
 0x159   :  { %v312_v49 = vrot.slane %v311_v48, 4 }
 0x15b   :  { %v313_v50 = vadd.f32 %v312_v49, %v311_v48 }
 0x15d   :  { %v314_v51 = vrot.slane %v313_v50, 2 }
 0x15f   :  { %v315_v52 = vadd.f32 %v314_v51, %v313_v50 }
 0x161   :  { %v316_v53 = vrot.slane %v315_v52, 1 }
 0x163   :  { %v317_v54 = vadd.f32 %v316_v53, %v315_v52 }
 0x165   :  { %v318_v55 = vmul.f32 0.1, %v317_v54  ;;  %v481_v54 = vld [vmem:[%s1952_s29] sm:$0x1] }
 0x167   :  { %v320_v56 = vadd.f32 1e-05, %v318_v55 }
 0x169   :  { %1418 = vrsqrt.f32 %v320_v56 }
 0x176   :  { %v1419_v61 = vpop.eup %1418 }
 0x177   :  { %v322_v62 = vmul.f32 %v1419_v61, %v319_v59 }
 0x179   :  { %v324_v1 = vmul.f32 %v322_v62, %v304_v41  ;;  %v330_v2 = vrot.slane %v322_v62, %v1800_v60 }
 0x17b   :  { %v325_v3 = vsub.f32 %v323_v63, %v324_v1  ;;  %v332_v4 = vmul.f32 %v330_v2, %v283_v27  ;;  %v333_v5 = vmul.f32 %v330_v2, %v284_v30 }
 0x17d   :  { %v338_v6 = vrot.slane %v325_v3, %v1800_v60 }
 0x17f   :  { %v340_v7 = vadd.f32 %v338_v6, %v332_v4  ;;  %v341_v8 = vadd.f32 %v338_v6, %v333_v5  ;;  %v1394_v5 = vld [vmem:[#allocation8 + $0x38] sm:$0xff]   ;;  %v1395_v6 = vld [vmem:[#allocation8 + $0x30] sm:$0xff]  }
 0x181   :  { %v342_v9 = vpack.c.bf16 %v341_v8, %v340_v7  ;;  %v1396_v7 = vld [vmem:[#allocation8 + $0x28] sm:$0xff]   ;;  %v1397_v8 = vld [vmem:[#allocation8 + $0x20] sm:$0xff]  }
 0x183   :  { %1271 = vmatmul.mubr.bf16.vlgmr.msra.gmra.mxu1 %v342_v9  ;;  %v1398_v9 = vld [vmem:[#allocation8 + $0x18] sm:$0xff]  }
 0x184   :  { %1310 = vmatprep.mubr.msk.bf16.mxu1 %vm1587_vm0, %v1586_v0  ;;  %1295 = vmatpush3.bf16.msra.mxu1 %v1394_v5  ;;  %v1407_v5 = vld [vmem:[#allocation10 + $0x10] sm:$0xff]  }
 0x185   :  { %1296 = vmatprep.subr.bf16.mxu1 %v1586_v0 }
 0x188   :  { %1297 = vmatpush3.bf16.msra.mxu1 %v1395_v6  ;;  %v1408_v6 = vld [vmem:[#allocation10 + $0x8] sm:$0xff]  }
 0x189   :  { %1298 = vmatprep.subr.bf16.mxu1 %v1586_v0 }
 0x18c   :  { %1299 = vmatpush3.bf16.msra.mxu1 %v1396_v7  ;;  %v1409_v7 = vld [vmem:[#allocation10] sm:$0xff]  }
 0x18d   :  { %1300 = vmatprep.subr.bf16.mxu1 %v1586_v0 }
 0x190   :  { %1301 = vmatpush3.bf16.msra.mxu1 %v1397_v8  ;;  %v1153_v8 = vld [vmem:[%s1924_s15] ss:$0 sm:$0xff] }
 0x191   :  { %1302 = vmatprep.subr.bf16.mxu1 %v1586_v0 }
 0x194   :  { %1303 = vmatpush3.bf16.msra.mxu1 %v1398_v9 }
 0x195   :  { %1304 = vmatprep.subr.bf16.mxu1 %v1586_v0 }
 0x198   :  { %1305 = vmatpush3.bf16.msra.mxu1 %v1399_v10 }
 0x199   :  { %1306 = vmatprep.subr.bf16.mxu1 %v1586_v0 }
 0x19c   :  { %1307 = vmatpush3.bf16.msra.mxu1 %v1400_v11 }
 0x19d   :  { %1308 = vmatprep.subr.bf16.mxu1 %v1586_v0 }
 0x1a0   :  { %1309 = vmatpush3.bf16.msra.mxu1 %v1401_v12 }
 0x1a1   :  { %1334 = vmatprep.subr.bf16.mxu1 %v1586_v0 }
 0x243   :  { %v448_v19 = vpop.f32.mrf.mxu1 }
 0x244   :  { %v449_v20 = vadd.f32 %v1135_v18, %v448_v19 }
 0x245   :  { %v1272_v21 = vpop.f32.mrf.mxu1 }
 0x246   :  { %v455_v23 = vmax.f32 %v449_v20, 0.0 }
 0x247   :  { %v451_v22 = vpop.f32.mrf.mxu1 }
 0x248   :  { %v452_v25 = vadd.f32 %v1135_v18, %v451_v22  ;;  %v457_v28 = vmul.f32 %v455_v23, %v1789_v24 }
 0x249   :  { %v1273_v26 = vpop.f32.mrf.mxu1 }
 0x24a   :  { %v456_v27 = vmax.f32 %v452_v25, 0.0 }
 0x24c   :  { %v458_v29 = vmul.f32 %v456_v27, %v1791_v31 }
 0x24e   :  { %v459_v30 = vadd.f32 %v458_v29, %v457_v28 }
 0x250   :  { %v460_v32 = vrot.slane %v459_v30, 4 }
 0x252   :  { %v461_v33 = vadd.f32 %v460_v32, %v459_v30 }
 0x254   :  { %v462_v34 = vrot.slane %v461_v33, 2 }
 0x256   :  { %v463_v35 = vadd.f32 %v462_v34, %v461_v33 }
 0x258   :  { %v464_v36 = vrot.slane %v463_v35, 1 }
 0x25a   :  { %v465_v37 = vadd.f32 %v464_v36, %v463_v35 }
 0x25c   :  { %v466_v38 = vmul.f32 0.1, %v465_v37 }
 0x25e   :  { %v467_v39 = vsub.f32 %v457_v28, %v466_v38  ;;  %v468_v40 = vsub.f32 %v458_v29, %v466_v38 }
 0x260   :  { %v469_v41 = vmul.f32 %v467_v39, %v1789_v24  ;;  %v470_v42 = vmul.f32 %v468_v40, %v1791_v31 }
 0x262   :  { %v471_v43 = vmul.f32 %v469_v41, %v469_v41  ;;  %v472_v44 = vmul.f32 %v470_v42, %v470_v42 }
 0x264   :  { %v473_v45 = vadd.f32 %v472_v44, %v471_v43 }
 0x266   :  { %v474_v46 = vrot.slane %v473_v45, 4 }
 0x268   :  { %v475_v47 = vadd.f32 %v474_v46, %v473_v45 }
 0x26a   :  { %v476_v48 = vrot.slane %v475_v47, 2 }
 0x26c   :  { %v477_v49 = vadd.f32 %v476_v48, %v475_v47 }
 0x26e   :  { %v478_v50 = vrot.slane %v477_v49, 1 }
 0x270   :  { %v479_v51 = vadd.f32 %v478_v50, %v477_v49  ;;  %v643_v49 = vld [vmem:[%s1921_s12] sm:$0x1] }
 0x272   :  { %v480_v52 = vmul.f32 0.1, %v479_v51 }
 0x274   :  { %v482_v53 = vadd.f32 1e-05, %v480_v52  ;;  %v647_v52 = vld [vmem:[%s1922_s13] sm:$0x1] }
 0x276   :  { %1420 = vrsqrt.f32 %v482_v53 }
 0x283   :  { %v1421_v55 = vpop.eup %1420 }
 0x284   :  { %v484_v56 = vmul.f32 %v1421_v55, %v481_v54 }
 0x286   :  { %v486_v58 = vmul.f32 %v484_v56, %v466_v38  ;;  %v492_v59 = vrot.slane %v484_v56, %v1800_v60 }
 0x288   :  { %v487_v61 = vsub.f32 %v485_v57, %v486_v58  ;;  %v494_v62 = vmul.f32 %v492_v59, %v455_v23  ;;  %v495_v63 = vmul.f32 %v492_v59, %v456_v27 }
 0x28a   :  { %v500_v1 = vrot.slane %v487_v61, %v1800_v60 }
 0x28c   :  { %v502_v2 = vadd.f32 %v500_v1, %v494_v62  ;;  %v503_v3 = vadd.f32 %v500_v1, %v495_v63  ;;  %v1402_v63 = vld [vmem:[#allocation10 + $0x38] sm:$0xff]   ;;  %v1403_v1 = vld [vmem:[#allocation10 + $0x30] sm:$0xff]  }
 0x28e   :  { %v504_v4 = vpack.c.bf16 %v503_v3, %v502_v2  ;;  %v1404_v2 = vld [vmem:[#allocation10 + $0x28] sm:$0xff]   ;;  %v1405_v3 = vld [vmem:[#allocation10 + $0x20] sm:$0xff]  }
 0x290   :  { %1291 = vmatmul.mubr.bf16.vlgmr.msra.gmra.mxu0 %v504_v4  ;;  %v1406_v4 = vld [vmem:[#allocation10 + $0x18] sm:$0xff]  }
 0x291   :  { %1330 = vmatprep.mubr.msk.bf16.mxu0 %vm1587_vm0, %v1586_v0  ;;  %1315 = vmatpush3.bf16.msra.mxu0 %v1402_v63  ;;  %v1415_v63 = vld [vmem:[#allocation11 + $0x10] sm:$0xff]  }
 0x292   :  { %1316 = vmatprep.subr.bf16.mxu0 %v1586_v0 }
 0x295   :  { %1317 = vmatpush3.bf16.msra.mxu0 %v1403_v1  ;;  %v1416_v1 = vld [vmem:[#allocation11 + $0x8] sm:$0xff]  }
 0x296   :  { %1318 = vmatprep.subr.bf16.mxu0 %v1586_v0 }
 0x299   :  { %1319 = vmatpush3.bf16.msra.mxu0 %v1404_v2  ;;  %v1417_v2 = vld [vmem:[#allocation11] sm:$0xff]  }
 0x29a   :  { %1320 = vmatprep.subr.bf16.mxu0 %v1586_v0 }
 0x29d   :  { %1321 = vmatpush3.bf16.msra.mxu0 %v1405_v3  ;;  %v1162_v3 = vld [vmem:[%s1928_s19] ss:$0 sm:$0xff] }
 0x29e   :  { %1322 = vmatprep.subr.bf16.mxu0 %v1586_v0 }
 0x2a1   :  { %1323 = vmatpush3.bf16.msra.mxu0 %v1406_v4 }
 0x2a2   :  { %1324 = vmatprep.subr.bf16.mxu0 %v1586_v0 }
 0x2a5   :  { %1325 = vmatpush3.bf16.msra.mxu0 %v1407_v5 }
 0x2a6   :  { %1326 = vmatprep.subr.bf16.mxu0 %v1586_v0 }
 0x2a9   :  { %1327 = vmatpush3.bf16.msra.mxu0 %v1408_v6 }
 0x2aa   :  { %1328 = vmatprep.subr.bf16.mxu0 %v1586_v0 }
 0x2ad   :  { %1329 = vmatpush3.bf16.msra.mxu0 %v1409_v7 }
 0x350   :  { %v610_v14 = vpop.f32.mrf.mxu0 }
 0x351   :  { %v611_v15 = vadd.f32 %v1144_v13, %v610_v14 }
 0x352   :  { %v1292_v16 = vpop.f32.mrf.mxu0 }
 0x353   :  { %v617_v18 = vmax.f32 %v611_v15, 0.0 }
 0x354   :  { %v613_v17 = vpop.f32.mrf.mxu0 }
 0x355   :  { %v614_v19 = vadd.f32 %v1144_v13, %v613_v17  ;;  %v619_v22 = vmul.f32 %v617_v18, %v1789_v24 }
 0x356   :  { %v1293_v20 = vpop.f32.mrf.mxu0 }
 0x357   :  { %v618_v21 = vmax.f32 %v614_v19, 0.0 }
 0x359   :  { %v620_v23 = vmul.f32 %v618_v21, %v1791_v31 }
 0x35b   :  { %v621_v25 = vadd.f32 %v620_v23, %v619_v22 }
 0x35d   :  { %v622_v26 = vrot.slane %v621_v25, 4 }
 0x35f   :  { %v623_v27 = vadd.f32 %v622_v26, %v621_v25 }
 0x361   :  { %v624_v28 = vrot.slane %v623_v27, 2 }
 0x363   :  { %v625_v29 = vadd.f32 %v624_v28, %v623_v27 }
 0x365   :  { %v626_v30 = vrot.slane %v625_v29, 1 }
 0x367   :  { %v627_v32 = vadd.f32 %v626_v30, %v625_v29 }
 0x369   :  { %v628_v33 = vmul.f32 0.1, %v627_v32 }
 0x36b   :  { %v629_v34 = vsub.f32 %v619_v22, %v628_v33  ;;  %v630_v35 = vsub.f32 %v620_v23, %v628_v33 }
 0x36d   :  { %v631_v36 = vmul.f32 %v629_v34, %v1789_v24  ;;  %v632_v37 = vmul.f32 %v630_v35, %v1791_v31 }
 0x36f   :  { %v633_v38 = vmul.f32 %v631_v36, %v631_v36  ;;  %v634_v39 = vmul.f32 %v632_v37, %v632_v37 }
 0x371   :  { %v635_v40 = vadd.f32 %v634_v39, %v633_v38 }
 0x373   :  { %v636_v41 = vrot.slane %v635_v40, 4 }
 0x375   :  { %v637_v42 = vadd.f32 %v636_v41, %v635_v40 }
 0x377   :  { %v638_v43 = vrot.slane %v637_v42, 2 }
 0x379   :  { %v639_v44 = vadd.f32 %v638_v43, %v637_v42 }
 0x37b   :  { %v640_v45 = vrot.slane %v639_v44, 1 }
 0x37d   :  { %v641_v46 = vadd.f32 %v640_v45, %v639_v44  ;;  %v805_v44 = vld [vmem:[%s1925_s16] sm:$0x1] }
 0x37f   :  { %v642_v47 = vmul.f32 0.1, %v641_v46 }
 0x381   :  { %v644_v48 = vadd.f32 1e-05, %v642_v47  ;;  %v809_v47 = vld [vmem:[%s1926_s17] sm:$0x1] }
 0x383   :  { %1422 = vrsqrt.f32 %v644_v48 }
 0x390   :  { %v1423_v50 = vpop.eup %1422 }
 0x391   :  { %v646_v51 = vmul.f32 %v1423_v50, %v643_v49 }
 0x393   :  { %v648_v53 = vmul.f32 %v646_v51, %v628_v33  ;;  %v654_v54 = vrot.slane %v646_v51, %v1800_v60 }
 0x395   :  { %v649_v55 = vsub.f32 %v647_v52, %v648_v53  ;;  %v656_v56 = vmul.f32 %v654_v54, %v617_v18  ;;  %v657_v57 = vmul.f32 %v654_v54, %v618_v21 }
 0x397   :  { %v662_v58 = vrot.slane %v649_v55, %v1800_v60 }
 0x399   :  { %v664_v59 = vadd.f32 %v662_v58, %v656_v56  ;;  %v665_v61 = vadd.f32 %v662_v58, %v657_v57  ;;  %v1410_v57 = vld [vmem:[#allocation11 + $0x38] sm:$0xff]   ;;  %v1411_v58 = vld [vmem:[#allocation11 + $0x30] sm:$0xff]  }
 0x39b   :  { %v666_v62 = vpack.c.bf16 %v665_v61, %v664_v59  ;;  %v1412_v59 = vld [vmem:[#allocation11 + $0x28] sm:$0xff]   ;;  %v1413_v61 = vld [vmem:[#allocation11 + $0x20] sm:$0xff]  }
 0x39d   :  { %1311 = vmatmul.mubr.bf16.vlgmr.msra.gmra.mxu1 %v666_v62  ;;  %v1414_v62 = vld [vmem:[#allocation11 + $0x18] sm:$0xff]  }
 0x39e   :  { %1350 = vmatprep.mubr.msk.bf16.mxu1 %vm1587_vm0, %v1586_v0  ;;  %1335 = vmatpush3.bf16.msra.mxu1 %v1410_v57 }
 0x39f   :  { %1336 = vmatprep.subr.bf16.mxu1 %v1586_v0 }
 0x3a2   :  { %1337 = vmatpush3.bf16.msra.mxu1 %v1411_v58 }
 0x3a3   :  { %1338 = vmatprep.subr.bf16.mxu1 %v1586_v0 }
 0x3a6   :  { %1339 = vmatpush3.bf16.msra.mxu1 %v1412_v59 }
 0x3a7   :  { %1340 = vmatprep.subr.bf16.mxu1 %v1586_v0 }
 0x3aa   :  { %1341 = vmatpush3.bf16.msra.mxu1 %v1413_v61 }
 0x3ab   :  { %1342 = vmatprep.subr.bf16.mxu1 %v1586_v0 }
 0x3ae   :  { %1343 = vmatpush3.bf16.msra.mxu1 %v1414_v62 }
 0x3af   :  { %1344 = vmatprep.subr.bf16.mxu1 %v1586_v0 }
 0x3b2   :  { %1345 = vmatpush3.bf16.msra.mxu1 %v1415_v63 }
 0x3b3   :  { %1346 = vmatprep.subr.bf16.mxu1 %v1586_v0 }
 0x3b6   :  { %1347 = vmatpush3.bf16.msra.mxu1 %v1416_v1 }
 0x3b7   :  { %1348 = vmatprep.subr.bf16.mxu1 %v1586_v0 }
 0x3ba   :  { %1349 = vmatpush3.bf16.msra.mxu1 %v1417_v2 }
 0x45d   :  { %v772_v9 = vpop.f32.mrf.mxu1 }
 0x45e   :  { %v773_v10 = vadd.f32 %v1153_v8, %v772_v9 }
 0x45f   :  { %v1312_v11 = vpop.f32.mrf.mxu1 }
 0x460   :  { %v779_v13 = vmax.f32 %v773_v10, 0.0 }
 0x461   :  { %v775_v12 = vpop.f32.mrf.mxu1 }
 0x462   :  { %v776_v14 = vadd.f32 %v1153_v8, %v775_v12  ;;  %v781_v17 = vmul.f32 %v779_v13, %v1789_v24 }
 0x463   :  { %v1313_v15 = vpop.f32.mrf.mxu1 }
 0x464   :  { %v780_v16 = vmax.f32 %v776_v14, 0.0 }
 0x466   :  { %v782_v18 = vmul.f32 %v780_v16, %v1791_v31 }
 0x468   :  { %v783_v19 = vadd.f32 %v782_v18, %v781_v17 }
 0x46a   :  { %v784_v20 = vrot.slane %v783_v19, 4 }
 0x46c   :  { %v785_v21 = vadd.f32 %v784_v20, %v783_v19 }
 0x46e   :  { %v786_v22 = vrot.slane %v785_v21, 2 }
 0x470   :  { %v787_v23 = vadd.f32 %v786_v22, %v785_v21 }
 0x472   :  { %v788_v25 = vrot.slane %v787_v23, 1 }
 0x474   :  { %v789_v26 = vadd.f32 %v788_v25, %v787_v23 }
 0x476   :  { %v790_v27 = vmul.f32 0.1, %v789_v26 }
 0x478   :  { %v791_v28 = vsub.f32 %v781_v17, %v790_v27  ;;  %v792_v29 = vsub.f32 %v782_v18, %v790_v27 }
 0x47a   :  { %v793_v30 = vmul.f32 %v791_v28, %v1789_v24  ;;  %v794_v32 = vmul.f32 %v792_v29, %v1791_v31 }
 0x47c   :  { %v795_v33 = vmul.f32 %v793_v30, %v793_v30  ;;  %v796_v34 = vmul.f32 %v794_v32, %v794_v32 }
 0x47e   :  { %v797_v35 = vadd.f32 %v796_v34, %v795_v33 }
 0x480   :  { %v798_v36 = vrot.slane %v797_v35, 4 }
 0x482   :  { %v799_v37 = vadd.f32 %v798_v36, %v797_v35 }
 0x484   :  { %v800_v38 = vrot.slane %v799_v37, 2 }
 0x486   :  { %v801_v39 = vadd.f32 %v800_v38, %v799_v37  ;;  %v967_v38 = vld [vmem:[%s1929_s20] sm:$0x1] }
 0x488   :  { %v802_v40 = vrot.slane %v801_v39, 1 }
 0x48a   :  { %v803_v41 = vadd.f32 %v802_v40, %v801_v39 }
 0x48c   :  { %v804_v42 = vmul.f32 0.1, %v803_v41 }
 0x48e   :  { %v806_v43 = vadd.f32 1e-05, %v804_v42 }
 0x490   :  { %1424 = vrsqrt.f32 %v806_v43 }
 0x49d   :  { %v1425_v45 = vpop.eup %1424 }
 0x49e   :  { %v808_v46 = vmul.f32 %v1425_v45, %v805_v44 }
 0x4a0   :  { %v810_v48 = vmul.f32 %v808_v46, %v790_v27  ;;  %v816_v49 = vrot.slane %v808_v46, %v1800_v60 }
 0x4a2   :  { %v811_v50 = vsub.f32 %v809_v47, %v810_v48  ;;  %v818_v51 = vmul.f32 %v816_v49, %v779_v13  ;;  %v819_v52 = vmul.f32 %v816_v49, %v780_v16  ;;  %v1171_v49 = vld [vmem:[%s1932_s23] ss:$0 sm:$0xff] }
 0x4a4   :  { %v824_v53 = vrot.slane %v811_v50, %v1800_v60 }
 0x4a6   :  { %v826_v54 = vadd.f32 %v824_v53, %v818_v51  ;;  %v827_v55 = vadd.f32 %v824_v53, %v819_v52 }
 0x4a8   :  { %v828_v56 = vpack.c.bf16 %v827_v55, %v826_v54 }
 0x4aa   :  { %1331 = vmatmul.mubr.bf16.vlgmr.msra.gmra.mxu0 %v828_v56 }
 0x56a   :  { %v934_v4 = vpop.f32.mrf.mxu0 }
 0x56b   :  { %v935_v5 = vadd.f32 %v1162_v3, %v934_v4 }
 0x56c   :  { %v1332_v6 = vpop.f32.mrf.mxu0 }
 0x56d   :  { %v941_v8 = vmax.f32 %v935_v5, 0.0 }
 0x56e   :  { %v937_v7 = vpop.f32.mrf.mxu0 }
 0x56f   :  { %v938_v9 = vadd.f32 %v1162_v3, %v937_v7  ;;  %v943_v12 = vmul.f32 %v941_v8, %v1789_v24 }
 0x570   :  { %v1333_v10 = vpop.f32.mrf.mxu0 }
 0x571   :  { %v942_v11 = vmax.f32 %v938_v9, 0.0 }
 0x573   :  { %v944_v13 = vmul.f32 %v942_v11, %v1791_v31 }
 0x575   :  { %v945_v14 = vadd.f32 %v944_v13, %v943_v12 }
 0x577   :  { %v946_v0 = vrot.slane %v945_v14, 4 }
 0x579   :  { %v947_v15 = vadd.f32 %v946_v0, %v945_v14 }
 0x57b   :  { %v948_v16 = vrot.slane %v947_v15, 2 }
 0x57d   :  { %v949_v17 = vadd.f32 %v948_v16, %v947_v15 }
 0x57f   :  { %v950_v18 = vrot.slane %v949_v17, 1 }
 0x581   :  { %v951_v19 = vadd.f32 %v950_v18, %v949_v17 }
 0x583   :  { %v952_v20 = vmul.f32 0.1, %v951_v19 }
 0x585   :  { %v953_v21 = vsub.f32 %v943_v12, %v952_v20  ;;  %v954_v22 = vsub.f32 %v944_v13, %v952_v20 }
 0x587   :  { %v955_v23 = vmul.f32 %v953_v21, %v1789_v24  ;;  %v956_v25 = vmul.f32 %v954_v22, %v1791_v31  ;;  %v971_v31 = vld [vmem:[%s1930_s21] sm:$0x1]  ;;  %s1110_s21 = sshll.u32 %s1589_s27, 4  ;;  %s1111_s21 = int_to_ptr.vmem [resolvable:$true] %s1110_s21 }
 0x588   :  { %s1548_s6 = scalar_lea.vmem %s1111_s21, 256  ;;  %p1553_p3 = scmp.lt.s32.totalorder %s1111_s21, %s1111_s21 }
 0x589   :  { %v957_v26 = vmul.f32 %v955_v23, %v955_v23  ;;  %v958_v27 = vmul.f32 %v956_v25, %v956_v25  ;;  %p1549_p2 = scmp.ne.s32.totalorder %s1111_s21, %s1548_s6  ;;  %p1554_p4 = scmp.lt.s32.totalorder %s1548_s6, %s1548_s6 }
 0x58b   :  { %v959_v28 = vadd.f32 %v958_v27, %v957_v26  ;;  %p1555_p5 = por %p1554_p4, %p1553_p3 }
 0x58d   :  { %v960_v29 = vrot.slane %v959_v28, 4  ;;  %p1556_p6 = pnand %p1555_p5, %p1549_p2 }
 0x58f   :  { %v961_v30 = vadd.f32 %v960_v29, %v959_v28 }
 0x591   :  { %v962_v32 = vrot.slane %v961_v30, 2 }
 0x593   :  { %v963_v33 = vadd.f32 %v962_v32, %v961_v30 }
 0x595   :  { %v964_v34 = vrot.slane %v963_v33, 1 }
 0x597   :  { %v965_v35 = vadd.f32 %v964_v34, %v963_v33 }
 0x599   :  { %v966_v36 = vmul.f32 0.1, %v965_v35 }
 0x59b   :  { %v968_v37 = vadd.f32 1e-05, %v966_v36 }
 0x59d   :  { %1426 = vrsqrt.f32 %v968_v37 }
 0x5aa   :  { %v1427_v39 = vpop.eup %1426 }
 0x5ab   :  { %v970_v24 = vmul.f32 %v1427_v39, %v967_v38 }
 0x5ad   :  { %v972_v40 = vmul.f32 %v970_v24, %v952_v20  ;;  %v978_v41 = vrot.slane %v970_v24, %v1800_v60 }
 0x5af   :  { %v973_v42 = vsub.f32 %v971_v31, %v972_v40  ;;  %v980_v43 = vmul.f32 %v978_v41, %v941_v8  ;;  %v981_v44 = vmul.f32 %v978_v41, %v942_v11 }
 0x5b1   :  { %v986_v45 = vrot.slane %v973_v42, %v1800_v60 }
 0x5b3   :  { %v988_v46 = vadd.f32 %v986_v45, %v980_v43  ;;  %v989_v47 = vadd.f32 %v986_v45, %v981_v44 }
 0x5b5   :  { %v990_v48 = vpack.c.bf16 %v989_v47, %v988_v46 }
 0x5b7   :  { %1351 = vmatmul.mubr.bf16.vlgmr.msra.gmra.mxu1 %v990_v48 }
 0x677   :  { %v1096_v50 = vpop.f32.mrf.mxu1 }
 0x678   :  { %v1097_v51 = vadd.f32 %v1171_v49, %v1096_v50 }
 0x679   :  { %v1352_v52 = vpop.f32.mrf.mxu1 }
 0x67a   :  { %1103 = vst [vmem:[#allocation13] sm:$0xff] %v1097_v51 }
 0x67b   :  { %v1099_v53 = vpop.f32.mrf.mxu1 }
 0x67c   :  { %v1100_v54 = vadd.f32 %v1171_v49, %v1099_v53 }
 0x67d   :  { %v1353_v55 = vpop.f32.mrf.mxu1 }
 0x67e   :  { %1104 = vst [vmem:[#allocation13 + $0x8] sm:$0xff] %v1100_v54 }
 0x67f   :  { %1559 = shalt.err (!%p1556_p6)
}
 0x680   :  { %s1590_s18 = smov 128   ;;  %s1591_s23 = smov 8  }
 0x681   :  { %1116 = dma.vmem_to_hbm [thread:$0]  %s1111_s21, 256, %s1933_s24, [#allocation4], %s1590_s18, %s1590_s18, %s1591_s23  }
 0x682   :  { %1576 = dma.done.wait [#allocation4], 256  }
 0x683   :  { %1577 = vsyncadd [#allocation4], 4294967040 }
 0x684   :  { %1120 = vsyncpa [#allocation3], 1 }
 0x685   :  { %1121 = vsyncpa [#allocation6], 1 }
 0x686   :  { %1122 = vsyncpa [#allocation9], 1 }
 0x687   :  { %1123 = vsyncpa [#allocation12], 1 }
 0x688   :  { %1124 = vsyncpa [#allocation4], 1 }

</bundles_post_ra>
